<compile_context>
chip_gen: v5e
topology: v5e:2x2
jax: 0.10.0
libtpu: 0.0.40
codegen_flags: <defaults>
</compile_context>

<pallas_src>
import functools

import jax
import jax.numpy as jnp
from jax import lax
from jax.experimental import pallas as pl
from jax.experimental.pallas import tpu as pltpu


def _model_kernel(x1_ref, x2full_ref, x2_ref, x3_ref, x4_ref, o_ref):
    """One row-tile of the forward pass.

    x1_ref:     (TM, N)  row tile of the matrix (streamed from HBM)
    x2full_ref: (1, N)   full matvec vector (resident; constant block index)
    x2_ref:     (1, TM)  rows of x2 for this tile (used by v13; needs M == N)
    x3_ref:     (1, TM)
    x4_ref:     (1, TM)
    o_ref:      (1, TM)  lane-dense output tile
    """
    # v1 = matvec(x1, x2) for this row tile as a single lane-dense MXU
    # contraction: (1, N) x (TM, N) contracting on N -> (1, TM).
    v1 = lax.dot_general(
        x2full_ref[...], x1_ref[...],
        dimension_numbers=(((1,), (1,)), ((), ())),
        preferred_element_type=jnp.float32,
        precision=lax.Precision.HIGHEST,
    )                                                       # (1, TM) f32

    x2 = x2_ref[...]
    x3 = x3_ref[...]
    x4 = x4_ref[...]

    v2 = v1 * 0.5
    v3 = x3 * v2
    # TODO(synk): dropout1..dropout4 implemented as identity (eval-mode
    # semantics); training-mode stochastic dropout is not implemented.
    v4 = jnp.tanh(v3)
    v5 = x4 + v4
    v6 = jnp.tanh(v5)
    v7 = v6 * v4
    v8 = jnp.tanh(v7)
    v9 = v8 * x3
    v10 = jnp.tanh(v9)
    v11 = v10 * v7
    v12 = v11 * x4
    v13 = v12 * x2          # valid because M == N
    v14 = v13 * x4
    o_ref[...] = v14.astype(o_ref.dtype)


def _vmem_capacity_bytes():
    """Per-core VMEM capacity; conservative 64 MiB fallback (v7x-safe)."""
    try:
        return int(pltpu.get_tpu_info().vmem_capacity_bytes)
    except Exception:  # pragma: no cover - e.g. CPU interpret / old jaxlib
        return 64 * 1024 * 1024


def _pick_tile(M, N, elem_bytes, tile_budget):
    """Pick the row-tile size TM.

    Constraints:
      * TM must be a multiple of 128 (or TM == M) so the (1, TM) vector
        blocks are lane-layout legal.
      * Working set (double-buffered x1 tile) must fit the VMEM budget.
      * Prefer tiles that leave >= 8 (then 4, then 2) grid steps so the
        single 'parallel' axis load-balances across 2 TensorCores (v7x).
    """
    cands = [c for c in (2048, 1024, 512, 256, 128) if M % c == 0]

    def fits(c):
        return 2 * c * N * elem_bytes + 256 * 1024 <= tile_budget

    fitting = [c for c in cands if fits(c)]
    if not fitting:
        if cands:
            return min(cands)   # smallest legal tile; vmem_limit covers it
        return M                # fallback: single (M, N) tile (small M)
    for min_steps in (8, 4, 2, 1):
        ok = [c for c in fitting if M // c >= min_steps]
        if ok:
            return max(ok)
    return max(fitting)


@functools.partial(jax.jit, static_argnames=("tm",))
def _model_forward_impl(x1, x2row_lhs, x2row, x3row, x4row, *, tm):
    M, N = x1.shape
    grid = (M // tm,)

    elem_bytes = jnp.dtype(x1.dtype).itemsize
    vmem_cap = _vmem_capacity_bytes()
    working = 2 * tm * N * elem_bytes + 8 * (N + tm) * 4 + (1 << 20)
    vmem_limit = int(max(16 << 20, min(vmem_cap - (8 << 20), working + (8 << 20))))

    out = pl.pallas_call(
        _model_kernel,
        out_shape=jax.ShapeDtypeStruct((1, M), jnp.float32),
        grid=grid,
        in_specs=[
            pl.BlockSpec((tm, N), lambda i: (i, 0)),   # x1 row tile (streamed)
            pl.BlockSpec((1, N), lambda i: (0, 0)),    # full x2 (resident)
            pl.BlockSpec((1, tm), lambda i: (0, i)),   # x2 rows for v13
            pl.BlockSpec((1, tm), lambda i: (0, i)),   # x3 rows
            pl.BlockSpec((1, tm), lambda i: (0, i)),   # x4 rows
        ],
        out_specs=pl.BlockSpec((1, tm), lambda i: (0, i)),
        compiler_params=pltpu.CompilerParams(
            dimension_semantics=("parallel",),
            vmem_limit_bytes=vmem_limit,
        ),
    )(x1, x2row_lhs, x2row, x3row, x4row)
    return out.reshape(M)


def model_forward(x1, x2, x3, x4, *, tm=None):
    """x1: (M, N), x2: (N,), x3: (M,), x4: (M,).  Requires M == N."""
    M, N = x1.shape
    assert M == N, "broadcast in v13 = v12 * x2 requires M == N"

    elem_bytes = jnp.dtype(x1.dtype).itemsize
    vmem_cap = _vmem_capacity_bytes()
    # Tile budget: leave headroom for vectors + compiler scratch; never
    # exceed physical VMEM (v7x: 64 MiB; v5e/v6e: 128 MiB -> bigger tiles).
    tile_budget = max(16 << 20, min(vmem_cap - (16 << 20), 96 << 20))

    if tm is None:
        tm = _pick_tile(M, N, elem_bytes, tile_budget)
    assert M % tm == 0, f"tile {tm} must divide M={M}"

    f32 = jnp.float32
    # Tiny vectors only -- no full-matrix wrapper copies of x1.
    x2row_lhs = x2.reshape(1, N).astype(x1.dtype)   # dot LHS matches x1 dtype
    x2row = x2.reshape(1, M).astype(f32)
    x3row = x3.reshape(1, M).astype(f32)
    x4row = x4.reshape(1, M).astype(f32)

    return _model_forward_impl(x1, x2row_lhs, x2row, x3row, x4row, tm=tm)


def _reference(x1, x2, x3, x4):
    v1 = jnp.dot(x1.astype(jnp.float32), x2.astype(jnp.float32),
                 precision=jax.lax.Precision.HIGHEST)
    v2 = v1 * 0.5
    v3 = x3 * v2
    v4 = jnp.tanh(v3)
    v5 = x4 + v4
    v6 = jnp.tanh(v5)
    v7 = v6 * v4
    v8 = jnp.tanh(v7)
    v9 = v8 * x3
    v10 = jnp.tanh(v9)
    v11 = v10 * v7
    v12 = v11 * x4
    v13 = v12 * x2
    v14 = v13 * x4
    return v14


if __name__ == "__main__":
    key = jax.random.PRNGKey(0)
    k1, k2, k3, k4 = jax.random.split(key, 4)

    M = N = 256  # small square demo shape (module's v13 requires M == N)
    x1 = jax.random.normal(k1, (M, N), dtype=jnp.float32)
    x2 = jax.random.normal(k2, (N,), dtype=jnp.float32)
    x3 = jax.random.normal(k3, (M,), dtype=jnp.float32)
    x4 = jax.random.normal(k4, (M,), dtype=jnp.float32)

    out = model_forward(x1, x2, x3, x4)   # auto-tiled (2 pipelined tiles here)
    out = jax.block_until_ready(out)

    ref = _reference(x1, x2, x3, x4)
    assert out.shape == ref.shape == (M,)
    assert jnp.allclose(out, ref, atol=1e-3, rtol=1e-3), (
        float(jnp.max(jnp.abs(out - ref))))

    print("KERNEL_OK")
</pallas_src>

<mosaic_0001>
module attributes {stable_mosaic.version = 11 : i64} {
  func.func @_model_kernel(%arg0: i32, %arg1: memref<128x256xf32, #tpu.memory_space<vmem>>, %arg2: memref<1x256xf32, #tpu.memory_space<vmem>>, %arg3: memref<1x128xf32, #tpu.memory_space<vmem>>, %arg4: memref<1x128xf32, #tpu.memory_space<vmem>>, %arg5: memref<1x128xf32, #tpu.memory_space<vmem>>, %arg6: memref<1x128xf32, #tpu.memory_space<vmem>>) attributes {dimension_semantics = [#tpu.dimension_semantics<parallel>], iteration_bounds = array<i64: 2>, scalar_prefetch = 0 : i64, scratch_operands = 0 : i64, tpu.core_type = #tpu.core_type<tc>, window_params = [{transform_indices = @transform_0, window_bounds = array<i64: 128, 256>}, {pipeline_mode = #tpu.pipeline_mode<synchronous>, transform_indices = @transform_1, window_bounds = array<i64: 1, 256>}, {transform_indices = @transform_2, window_bounds = array<i64: 1, 128>}, {transform_indices = @transform_3, window_bounds = array<i64: 1, 128>}, {transform_indices = @transform_4, window_bounds = array<i64: 1, 128>}, {transform_indices = @transform_5, window_bounds = array<i64: 1, 128>}]} {
    %c0 = arith.constant 0 : index
    %c0_0 = arith.constant 0 : index
    %0 = vector.load %arg2[%c0, %c0_0] : memref<1x256xf32, #tpu.memory_space<vmem>>, vector<1x256xf32>
    %c0_1 = arith.constant 0 : index
    %c0_2 = arith.constant 0 : index
    %1 = vector.load %arg1[%c0_1, %c0_2] : memref<128x256xf32, #tpu.memory_space<vmem>>, vector<128x256xf32>
    %cst = arith.constant dense<0.000000e+00> : vector<1x128xf32>
    %2 = tpu.matmul %0, %1, %cst {dimension_numbers = #tpu.dot_dimension_numbers<[1], [1], [0], [0], [0, 0, 1, 0], [], []>, precision = #tpu.contract_precision<fp32>} : vector<1x256xf32>, vector<128x256xf32>, vector<1x128xf32> -> vector<1x128xf32>
    %c0_3 = arith.constant 0 : index
    %c0_4 = arith.constant 0 : index
    %3 = vector.load %arg3[%c0_3, %c0_4] : memref<1x128xf32, #tpu.memory_space<vmem>>, vector<1x128xf32>
    %c0_5 = arith.constant 0 : index
    %c0_6 = arith.constant 0 : index
    %4 = vector.load %arg4[%c0_5, %c0_6] : memref<1x128xf32, #tpu.memory_space<vmem>>, vector<1x128xf32>
    %c0_7 = arith.constant 0 : index
    %c0_8 = arith.constant 0 : index
    %5 = vector.load %arg5[%c0_7, %c0_8] : memref<1x128xf32, #tpu.memory_space<vmem>>, vector<1x128xf32>
    %cst_9 = arith.constant 5.000000e-01 : f32
    %6 = vector.broadcast %cst_9 : f32 to vector<1x128xf32>
    %7 = arith.mulf %2, %6 : vector<1x128xf32>
    %8 = arith.mulf %4, %7 : vector<1x128xf32>
    %9 = math.tanh %8 : vector<1x128xf32>
    %10 = arith.addf %5, %9 : vector<1x128xf32>
    %11 = math.tanh %10 : vector<1x128xf32>
    %12 = arith.mulf %11, %9 : vector<1x128xf32>
    %13 = math.tanh %12 : vector<1x128xf32>
    %14 = arith.mulf %13, %4 : vector<1x128xf32>
    %15 = math.tanh %14 : vector<1x128xf32>
    %16 = arith.mulf %15, %12 : vector<1x128xf32>
    %17 = arith.mulf %16, %5 : vector<1x128xf32>
    %18 = arith.mulf %17, %3 : vector<1x128xf32>
    %19 = arith.mulf %18, %5 : vector<1x128xf32>
    %c0_10 = arith.constant 0 : index
    %c0_11 = arith.constant 0 : index
    %20 = vector.load %arg6[%c0_10, %c0_11] : memref<1x128xf32, #tpu.memory_space<vmem>>, vector<1x128xf32>
    tpu.vector_store %arg6[%c0_10, %c0_11], %19 {strides = array<i32>} : memref<1x128xf32, #tpu.memory_space<vmem>>, vector<1x128xf32>,
    return
  }
  func.func @transform_0(%arg0: i32) -> (i32, i32) {
    %c0_i32 = arith.constant 0 : i32
    %c0_i32_0 = arith.constant 0 : i32
    return %arg0, %c0_i32 : i32, i32
  }
  func.func @transform_1(%arg0: i32) -> (i32, i32) {
    %c0_i32 = arith.constant 0 : i32
    %c0_i32_0 = arith.constant 0 : i32
    %c0_i32_1 = arith.constant 0 : i32
    return %c0_i32, %c0_i32_0 : i32, i32
  }
  func.func @transform_2(%arg0: i32) -> (i32, i32) {
    %c0_i32 = arith.constant 0 : i32
    %c0_i32_0 = arith.constant 0 : i32
    return %c0_i32, %arg0 : i32, i32
  }
  func.func @transform_3(%arg0: i32) -> (i32, i32) {
    %c0_i32 = arith.constant 0 : i32
    %c0_i32_0 = arith.constant 0 : i32
    return %c0_i32, %arg0 : i32, i32
  }
  func.func @transform_4(%arg0: i32) -> (i32, i32) {
    %c0_i32 = arith.constant 0 : i32
    %c0_i32_0 = arith.constant 0 : i32
    return %c0_i32, %arg0 : i32, i32
  }
  func.func @transform_5(%arg0: i32) -> (i32, i32) {
    %c0_i32 = arith.constant 0 : i32
    %c0_i32_0 = arith.constant 0 : i32
    return %c0_i32, %arg0 : i32, i32
  }
}

</mosaic_0001>

<bundles_post_ra>
// kernel: _model_forward_impl.1
= control target key start
LH: loop header
LB: loop body
LE: loop exit
PB: predicated region body
PF: predicated region fallthrough
CT: control target
= control target key end

     0   :  { %s2268_s0 = inlined_call_operand.hbm [shape: f32[256,256], index: 0, kind: input, shape index: {}]   ;;  %s2269_s1 = inlined_call_operand.hbm [shape: f32[1,256], index: 1, kind: input, shape index: {}]   ;;  %s2270_s2 = inlined_call_operand.hbm [shape: f32[1,256], index: 2, kind: input, shape index: {}]   ;;  %s2271_s3 = inlined_call_operand.vmem [shape: f32[1,256], index: 3, kind: input, shape index: {}]   ;;  %s2272_s4 = inlined_call_operand.hbm [shape: f32[1,256], index: 4, kind: input, shape index: {}]   ;;  %s2273_s5 = inlined_call_operand.hbm [shape: f32[1,256], index: 5, kind: output, shape index: {}]  }
   0x1   :  { %2288 = sst [smem:[#allocation14_spill]] %s2268_s0 }
   0x2   :  { %10 = vsyncpa [#allocation3], 0 }
   0x3   :  { %12 = vsyncpa [#allocation3 + $0x1], 0 }
   0x4   :  { %13 = vsyncpa [#allocation6], 0 }
   0x5   :  { %14 = vsyncpa [#allocation4], 0 }
   0x6   :  { %16 = vsyncpa [#allocation4 + $0x1], 0  ;;  %s1527_s18 = smov 0   ;;  %s1529_s19 = smov 0  }
   0x7   :  { %s1531_s20 = smov 0   ;;  %s1533_s21 = smov 0  }
   0x8 LB: > { %s1548_s22 = sadd.s32 1, %s1492_s21   ;;  %s29_s23 = sadd.s32 1, %s1488_s20  ;;  %s1492_s21 = sphi %s1533_s21, %s2314_s21   ;;  %s1488_s20 = sphi %s1531_s20, %s2313_s20   ;;  %s1484_s19 = sphi %s1529_s19, %s2312_s19   ;;  %s1480_s18 = sphi %s1527_s18, %s2311_s18  }
   0x9   : > { %s26_s24 = ssub.s32 %s1492_s21, %s1548_s22  ;;  %p36_p0 = scmp.ne.s32.totalorder %s1488_s20, %s1484_s19 }
   0xa   : > { %p27_p1 = scmp.eq.s32.totalorder %s26_s24, 0  ;;  %p37_p2 = scmp.eq.s32.totalorder %s1492_s21, 0 }
   0xb   : > { %p1252_p4 = scmp.lt.s32.totalorder %s1492_s21, 2  ;;  %s203_s26 = sand.u32 1, %s1492_s21  }
   0xc   : > { %s1559_s25 = scalar_select %p27_p1, %s1488_s20, %s29_s23  }
   0xd   : > { %p38_p5 = por %p37_p2, %p36_p0  ;;  %s1566_s27 = sand.u32 1, %s1488_s20  }
   0xe   : > { %s1210_s28 = sshll.u32 %s1566_s27, 8  ;;  %s1220_s29 = sshll.u32 %s1492_s21, 8 }
   0xf   : > { %s2289_s0 = sld [smem:[#allocation14_spill]]  ;;  %s207_s9 = scalar_lea.vmem [#allocation2], %s1210_s28 }
  0x10   : > { %s216_s10 = sshll.u32 %s207_s9, 4  ;;  %p1575_p6 = pnand %p1252_p4, %p38_p5  ;;  %s217_s10 = int_to_ptr.vmem [resolvable:$true] %s216_s10 }
  0x11   : > { %s232_s14 = scalar_lea.hbm %s2270_s2, %s1492_s21  ;;  %s1583_s15 = scalar_lea.sflag [#allocation3], %s203_s26 }
  0x12   : > { %p1302_p8 = pneg %p1575_p6 }
  0x15   : > { %s213_s7 = scalar_lea.hbm %s2289_s0, %s1220_s29  ;;  %s1305_s28 = scalar_lea.hbm %s2289_s0, 512 }
  0x16   : > { %s214_s8 = sshll.u32 %s213_s7, 4  ;;  %s215_s8 = int_to_ptr.hbm [resolvable:$true] %s214_s8 }
  0x17   : > { %s1298_s16 = sshra.s32 %s215_s8, 4  ;;  %s1299_s16 = int_to_ptr.hbm [resolvable:$true] %s1298_s16 }
  0x18   : > { %s1300_s17 = scalar_lea.hbm %s1299_s16, 256  ;;  %p1306_p11 = scmp.lt.s32.totalorder %s1299_s16, %s2289_s0 }
  0x19   : > { %p1301_p7 = scmp.ne.s32.totalorder %s1299_s16, %s1300_s17  ;;  %p1307_p12 = scmp.lt.s32.totalorder %s1305_s28, %s1300_s17 }
  0x1b   : > { %p1303_p9 = pnand %p1302_p8, %p1301_p7  ;;  %p1308_p13 = por %p1307_p12, %p1306_p11 }
  0x1d   : > { %p1304_p10 = pneg %p1303_p9 }
  0x1f   : > { %p1309_p1 = pnand %p1308_p13, %p1304_p10 }
  0x21   : > { %1312 = shalt.err (!%p1309_p1)
}
  0x22   : > { %s1494_s26 = smov 256   ;;  %s1495_s6 = smov 16  }
  0x23   : > { %1240 = dma.hbm_to_vmem [thread:$0]  (!%p1575_p6), %s215_s8, 4096, %s217_s10, %s1583_s15, %s1494_s26, %s1494_s26, %s1495_s6  }
  0x24   : > { %s234_s7 = sshll.u32 %s232_s14, 4  ;;  %s229_s9 = scalar_lea.vmem [#allocation7], %s1566_s27  ;;  %s235_s7 = int_to_ptr.hbm [resolvable:$true] %s234_s7 }
  0x25   : > { %s236_s12 = sshll.u32 %s229_s9, 4  ;;  %s1328_s13 = sshra.s32 %s235_s7, 4  ;;  %s237_s12 = int_to_ptr.vmem [resolvable:$true] %s236_s12  ;;  %s1329_s13 = int_to_ptr.hbm [resolvable:$true] %s1328_s13 }
  0x26   : > { %s1330_s16 = scalar_lea.hbm %s1329_s13, 1  ;;  %s1335_s24 = scalar_lea.hbm %s2270_s2, 2 }
  0x27   : > { %p1331_p2 = scmp.ne.s32.totalorder %s1329_s13, %s1330_s16  ;;  %p1336_p7 = scmp.lt.s32.totalorder %s1329_s13, %s2270_s2 }
  0x28   : > { %p1337_p9 = scmp.lt.s32.totalorder %s1335_s24, %s1330_s16 }
  0x29   : > { %p1333_p4 = pnand %p1331_p2, %p1302_p8 }
  0x2a   : > { %p1338_p10 = por %p1337_p9, %p1336_p7 }
  0x2b   : > { %p1334_p5 = pneg %p1333_p4 }
  0x2d   : > { %p1339_p11 = pnand %p1338_p10, %p1334_p5 }
  0x2f   : > { %1342 = shalt.err (!%p1339_p11)
}
  0x30   : > { %1243 = dma.hbm_to_vmem [thread:$0]  (!%p1575_p6), %s235_s7, 16, %s237_s12, %s1583_s15  }
  0x31   : > { %s1613_s8 = sadd.s32 4294967295, %s1492_s21   ;;  %s1206_s10 = sadd.s32 4294967294, %s1492_s21  }
  0x32   : > { %p42_p12 = scmp.ne.s32.totalorder %s1484_s19, %s1480_s18  ;;  %p2274_p13 = scmp.eq.s32.totalorder %s1613_s8, 0 }
  0x33   : > { %p165_p1 = scmp.eq.s32.totalorder %s1613_s8, 1  ;;  %p171_p2 = scmp.eq.s32.totalorder %s1206_s10, 1 }
  0x34   : > { %p1622_p4 = por %p2274_p13, %p42_p12  ;;  %p1207_p5 = scmp.ge.s32.totalorder %s1492_s21, 1 }
  0x35   : > { %p1630_p7 = por %p165_p1, %p36_p0  ;;  %p1634_p9 = por %p171_p2, %p42_p12 }
  0x36   : > { %p178_p10 = scmp.lt.s32.totalorder %s1492_s21, 3  ;;  %s190_s9 = sshll.u32 %s2269_s1, 4  ;;  %s191_s9 = int_to_ptr.hbm [resolvable:$true] %s190_s9 }
  0x37   : > { %s1496_s13 = smov [#allocation5]   ;;  %s255_s24 = scalar_lea.hbm %s2272_s4, %s1492_s21 }
  0x38   : > { %p1642_p11 = pnand %p1207_p5, %p178_p10  ;;  %s192_s16 = sshll.u32 %s1496_s13, 4  ;;  %s193_s16 = int_to_ptr.vmem [resolvable:$true] %s192_s16 }
  0x39   : > { %s252_s28 = scalar_lea.vmem [#allocation8], %s1566_s27  ;;  %s257_s10 = sshll.u32 %s255_s24, 4  ;;  %s258_s10 = int_to_ptr.hbm [resolvable:$true] %s257_s10 }
  0x3a   : > { %p1233_p0 = pneg %p1642_p11  ;;  %s259_s29 = sshll.u32 %s252_s28, 4  ;;  %s260_s29 = int_to_ptr.vmem [resolvable:$true] %s259_s29 }
  0x3b   : > { %s1388_s6 = sshra.s32 %s258_s10, 4  ;;  %s1395_s17 = scalar_lea.hbm %s2272_s4, 2  ;;  %s1389_s6 = int_to_ptr.hbm [resolvable:$true] %s1388_s6 }
  0x3c   : > { %p1234_p12 = pnand %p1233_p0, %p2274_p13  ;;  %s1390_s7 = scalar_lea.hbm %s1389_s6, 1 }
  0x3d   : > { %p1391_p1 = scmp.ne.s32.totalorder %s1389_s6, %s1390_s7  ;;  %p1396_p10 = scmp.lt.s32.totalorder %s1389_s6, %s2272_s4 }
  0x3e   : > { %1236 = dma.hbm_to_vmem [thread:$0]  (!%p1234_p12), %s191_s9, 32, %s193_s16, [#allocation6]  }
  0x3f   : > { %p1393_p2 = pnand %p1391_p1, %p1302_p8  ;;  %p1397_p0 = scmp.lt.s32.totalorder %s1395_s17, %s1390_s7 }
  0x41   : > { %p1394_p5 = pneg %p1393_p2  ;;  %p1398_p3 = por %p1397_p0, %p1396_p10 }
  0x43   : > { %p1399_p13 = pnand %p1398_p3, %p1394_p5 }
  0x45   : > { %1402 = shalt.err (!%p1399_p13)
}
  0x46   : > { %1246 = dma.hbm_to_vmem [thread:$0]  (!%p1575_p6), %s258_s10, 16, %s260_s29, %s1583_s15  }
  0x47   : > { %268 = sbr.rel (%p1642_p11) target bundleno = 466 (0x1d2), region = 40  ;;  %s270_s0 = sand.u32 (!%p1642_p11), 1, %s1613_s8  }
  0x48   : > { %s1671_s9 = sand.u32 (!%p1642_p11), 1, %s1484_s19   ;;  %s271_s24 = scalar_lea.sflag (!%p1642_p11), [#allocation3], %s270_s0 }
  0x49   : > { %s1215_s16 = sshll.u32 (!%p1642_p11), %s1671_s9, 8 }
  0x4a   : > { %s1674_s28 = scalar_lea.vmem (!%p1642_p11), [#allocation2], %s1215_s16 }
  0x4c   : > { %1463 = dma.done.wait (%p1622_p4), %s271_s24, 4096  }
  0x4d   : > { %1465 = vsyncadd (%p1622_p4), %s271_s24, 4294963200  ;;  %p2295_p3 = scmp.eq.s32.totalorder %s1613_s8, 0 }
  0x4f   : > { %1467 = dma.done.wait (%p2295_p3), [#allocation6], 32   ;;  %p2296_p6 = pmov %p2295_p3 }
  0x50   : > { %s288_s11 = scalar_lea.vmem [#allocation7], %s1671_s9 }
  0x51   : > { %1469 = vsyncadd (%p2296_p6), [#allocation6], 4294967264 }
  0x52   : > { %1471 = dma.done.wait (%p1622_p4), %s271_s24, 32  }
  0x53   : > { %1473 = vsyncadd (%p1622_p4), %s271_s24, 4294967264  ;;  %v370_v0 = vld [vmem:[%s1674_s28 + $0xf0] sm:$0xff]  ;;  %v368_v1 = vld [vmem:[%s1674_s28 + $0xe0] sm:$0xff]  ;;  %p336_p8 = scmp.lt.s32.totalorder %s1613_s8, 1  ;;  %s297_s10 = scalar_lea.vmem [#allocation8], %s1671_s9 }
  0x54   : > { %v366_v2 = vld [vmem:[%s1674_s28 + $0xd0] sm:$0xff]  ;;  %v1692_v3 = vand.u32 4294901760, %v370_v0  ;;  %v1694_v4 = vand.u32 4294901760, %v368_v1  ;;  %v364_v6 = vld [vmem:[%s1674_s28 + $0xc0] sm:$0xff]  ;;  %s1085_s13 = scalar_lea.hbm %s2273_s5, %s1613_s8  ;;  %s334_s17 = scalar_lea.vmem [#allocation9], %s1671_s9 }
  0x55   : > { %v1696_v5 = vand.u32 4294901760, %v366_v2  ;;  %v1707_v9 = vand.u32 4294901760, %v364_v6  ;;  %v362_v11 = vld [vmem:[%s1674_s28 + $0xb0] sm:$0xff]  ;;  %v360_v19 = vld [vmem:[%s1674_s28 + $0xa0] sm:$0xff]  ;;  %s337_s15 = scalar_select %p336_p8, %s1613_s8, 1 }
  0x56   : > { %378 = vmatpush.xpose.msra.mxu0 %v1692_v3  ;;  %v1701_v7 = vsub.f32 %v370_v0, %v1692_v3  ;;  %574 = vmatpush.xpose.msra.mxu3 %v1692_v3  ;;  %v1705_v8 = vsub.f32 %v368_v1, %v1694_v4  ;;  %v1716_v14 = vand.u32 4294901760, %v362_v11  ;;  %v1732_v21 = vand.u32 4294901760, %v360_v19  ;;  %v358_v26 = vld [vmem:[%s1674_s28 + $0x90] sm:$0xff]  ;;  %v356_v32 = vld [vmem:[%s1674_s28 + $0x80] sm:$0xff]  ;;  %s1087_s27 = sshll.u32 %s334_s17, 4  ;;  %s1089_s23 = sshll.u32 %s1085_s13, 4  ;;  %s1088_s27 = int_to_ptr.vmem [resolvable:$true] %s1087_s27  ;;  %s1090_s23 = int_to_ptr.hbm [resolvable:$true] %s1089_s23 }
  0x57   : > { %v1710_v10 = vsub.f32 %v366_v2, %v1696_v5  ;;  %v1728_v18 = vsub.f32 %v364_v6, %v1707_v9  ;;  %v1745_v27 = vand.u32 4294901760, %v358_v26  ;;  %v1765_v36 = vand.u32 4294901760, %v356_v32  ;;  %v354_v38 = vld [vmem:[%s1674_s28 + $0x70] sm:$0xff]  ;;  %v352_v44 = vld [vmem:[%s1674_s28 + $0x60] sm:$0xff]  ;;  %s338_s29 = scalar_lea.vmem %s2271_s3, %s337_s15  ;;  %s1077_s0 = scalar_lea.sflag [#allocation4], %s1671_s9 }
  0x58   : > { %521 = vmatpush.xpose.msra.mxu2 %v1701_v7  ;;  %v420_v12 = vand.u32 4294901760, %v1701_v7  ;;  %v426_v13 = vand.u32 4294901760, %v1705_v8  ;;  %v1740_v25 = vsub.f32 %v362_v11, %v1716_v14  ;;  %v1753_v31 = vsub.f32 %v360_v19, %v1732_v21  ;;  %v350_v50 = vld [vmem:[%s1674_s28 + $0x50] sm:$0xff]  ;;  %v348_v56 = vld [vmem:[%s1674_s28 + $0x40] sm:$0xff]  ;;  %s1432_s16 = sshra.s32 %s1090_s23, 4  ;;  %s1433_s16 = int_to_ptr.hbm [resolvable:$true] %s1432_s16 }
  0x59   : > { %v432_v17 = vand.u32 4294901760, %v1710_v10  ;;  %v438_v24 = vand.u32 4294901760, %v1728_v18  ;;  %v1759_v33 = vsub.f32 %v358_v26, %v1745_v27  ;;  %v1776_v42 = vand.u32 4294901760, %v354_v38  ;;  %v346_v62 = vld [vmem:[%s1674_s28 + $0x30] sm:$0xff]  ;;  %v344_v11 = vld [vmem:[%s1674_s28 + $0x20] sm:$0xff]  ;;  %s1434_s24 = scalar_lea.hbm %s1433_s16, 1  ;;  %p1439_p12 = scmp.lt.s32.totalorder %s1433_s16, %s2273_s5 }
  0x5a   : > { %380 = vmatpush.xpose.msra.mxu0 %v1694_v4  ;;  %v421_v15 = vsub.f32 %v1701_v7, %v420_v12  ;;  %576 = vmatpush.xpose.msra.mxu3 %v1694_v4  ;;  %v427_v16 = vsub.f32 %v1705_v8, %v426_v13  ;;  %v444_v30 = vand.u32 4294901760, %v1740_v25  ;;  %v450_v37 = vand.u32 4294901760, %v1753_v31  ;;  %v342_v26 = vld [vmem:[%s1674_s28 + $0x10] sm:$0xff]  ;;  %v359_v7 = vld [vmem:[%s1674_s28 + $0x98] sm:$0xff]  ;;  %p1435_p13 = scmp.ne.s32.totalorder %s1433_s16, %s1434_s24 }
  0x5b   : > { %v433_v23 = vsub.f32 %v1710_v10, %v432_v17  ;;  %v439_v29 = vsub.f32 %v1728_v18, %v438_v24  ;;  %v456_v39 = vand.u32 4294901760, %v1759_v33  ;;  %v1779_v43 = vsub.f32 %v356_v32, %v1765_v36 }
  0x5c   : > { %v422_v20 = vand.u32 4294901760, %v421_v15  ;;  %524 = vmatpush.xpose.msra.mxu2 %v1705_v8  ;;  %v428_v22 = vand.u32 4294901760, %v427_v16  ;;  %v445_v35 = vsub.f32 %v1740_v25, %v444_v30  ;;  %v451_v41 = vsub.f32 %v1753_v31, %v450_v37  ;;  %v371_v16 = vld [vmem:[%s1674_s28 + $0xf8] sm:$0xff]  ;;  %p1436_p4 = pnand %p1435_p13, %p1630_p7 }
  0x5d   : > { %v434_v28 = vand.u32 4294901760, %v433_v23  ;;  %v440_v34 = vand.u32 4294901760, %v439_v29  ;;  %v457_v45 = vsub.f32 %v1759_v33, %v456_v39  ;;  %v1788_v47 = vand.u32 4294901760, %v352_v44  ;;  %v369_v29 = vld [vmem:[%s1674_s28 + $0xe8] sm:$0xff] }
  0x5e   : > { %382 = vmatpush.xpose.msra.mxu0 %v1696_v5  ;;  %423 = vmatpush.xpose.msra.mxu1 %v422_v20  ;;  %v446_v40 = vand.u32 4294901760, %v445_v35  ;;  %v452_v46 = vand.u32 4294901760, %v451_v41  ;;  %v462_v48 = vand.u32 4294901760, %v1779_v43  ;;  %v1792_v49 = vsub.f32 %v354_v38, %v1776_v42  ;;  %v340_v41 = vld [vmem:[%s1674_s28] sm:$0xff]  ;;  %p1437_p11 = pneg %p1436_p4 }
  0x5f   : > { %578 = vmatpush.xpose.msra.mxu3 %v1696_v5  ;;  %v458_v51 = vand.u32 4294901760, %v457_v45  ;;  %v1801_v53 = vand.u32 4294901760, %v350_v50  ;;  %v1805_v55 = vsub.f32 %v352_v44, %v1788_v47  ;;  %v1810_v57 = vand.u32 4294901760, %v348_v56 }
  0x60   : > { %527 = vmatpush.xpose.msra.mxu2 %v1710_v10  ;;  %v463_v52 = vsub.f32 %v1779_v43, %v462_v48  ;;  %v468_v54 = vand.u32 4294901760, %v1792_v49  ;;  %v1830_v2 = vand.u32 4294901760, %v346_v62  ;;  %v1857_v35 = vand.u32 4294901760, %v342_v26  ;;  %v355_v10 = vld [vmem:[%s1674_s28 + $0x78] sm:$0xff] }
  0x61   : > { %v2284_v60 = vand.u32 4294901760, %v1805_v55  ;;  %v1818_v61 = vsub.f32 %v350_v50, %v1801_v53  ;;  %v1824_v63 = vsub.f32 %v348_v56, %v1810_v57  ;;  %v1865_v44 = vand.u32 4294901760, %v369_v29  ;;  %v367_v50 = vld [vmem:[%s1674_s28 + $0xd8] sm:$0xff] }
  0x62   : > { %384 = vmatpush.xpose.msra.mxu0 %v1707_v9  ;;  %429 = vmatpush.xpose.msra.mxu1 %v428_v22  ;;  %v464_v58 = vand.u32 4294901760, %v463_v52  ;;  %v469_v59 = vsub.f32 %v1792_v49, %v468_v54  ;;  %v1842_v22 = vand.u32 4294901760, %v344_v11  ;;  %v1845_v23 = vsub.f32 %v346_v62, %v1830_v2 }
  0x63   : > { %580 = vmatpush.xpose.msra.mxu3 %v1707_v9  ;;  %v475_v1 = vsub.f32 %v1805_v55, %v2284_v60  ;;  %v2283_v6 = vand.u32 4294901760, %v1818_v61  ;;  %v2279_v15 = vand.u32 4294901760, %v1824_v63  ;;  %v1876_v52 = vand.u32 4294901760, %v340_v41  ;;  %v357_v60 = vld [vmem:[%s1674_s28 + $0x88] sm:$0xff] }
  0x64   : > { %530 = vmatpush.xpose.msra.mxu2 %v1728_v18  ;;  %v470_v0 = vand.u32 4294901760, %v469_v59  ;;  %v2277_v38 = vand.u32 4294901760, %v1845_v23  ;;  %v1884_v59 = vsub.f32 %v369_v29, %v1865_v44  ;;  %v353_v18 = vld [vmem:[%s1674_s28 + $0x68] sm:$0xff] }
  0x65   : > { %v476_v19 = vand.u32 4294901760, %v475_v1  ;;  %v481_v20 = vsub.f32 %v1818_v61, %v2283_v6  ;;  %v487_v32 = vsub.f32 %v1824_v63, %v2279_v15  ;;  %v365_v1 = vld [vmem:[%s1674_s28 + $0xc8] sm:$0xff] }
  0x66   : > { %386 = vmatpush.xpose.msra.mxu0 %v1716_v14  ;;  %435 = vmatpush.xpose.msra.mxu1 %v434_v28  ;;  %v1850_v28 = vand.u32 4294901760, %v371_v16 }
  0x67   : > { %582 = vmatpush.xpose.msra.mxu3 %v1716_v14 }
  0x68   : > { %533 = vmatpush.xpose.msra.mxu2 %v1740_v25  ;;  %v1869_v45 = vsub.f32 %v371_v16, %v1850_v28 }
  0x6a   : > { %388 = vmatpush.xpose.msra.mxu0 %v1732_v21  ;;  %441 = vmatpush.xpose.msra.mxu1 %v440_v34  ;;  %v482_v34 = vand.u32 4294901760, %v481_v20  ;;  %v2276_v62 = vand.u32 4294901760, %v1869_v45  ;;  %v1897_v20 = vsub.f32 %v340_v41, %v1876_v52 }
  0x6b   : > { %584 = vmatpush.xpose.msra.mxu3 %v1732_v21 }
  0x6c   : > { %536 = vmatpush.xpose.msra.mxu2 %v1753_v31  ;;  %v762_v29 = vsub.f32 %v1869_v45, %v2276_v62 }
  0x6e   : > { %390 = vmatpush.xpose.msra.mxu0 %v1745_v27  ;;  %447 = vmatpush.xpose.msra.mxu1 %v446_v40  ;;  %v1861_v40 = vsub.f32 %v344_v11, %v1842_v22  ;;  %v763_v62 = vand.u32 4294901760, %v762_v29 }
  0x6f   : > { %586 = vmatpush.xpose.msra.mxu3 %v1745_v27 }
  0x70   : > { %539 = vmatpush.xpose.msra.mxu2 %v1759_v33  ;;  %v2275_v56 = vand.u32 4294901760, %v1861_v40 }
  0x72   : > { %392 = vmatpush.xpose.msra.mxu0 %v1765_v36  ;;  %453 = vmatpush.xpose.msra.mxu1 %v452_v46  ;;  %v488_v46 = vand.u32 4294901760, %v487_v32  ;;  %v499_v16 = vsub.f32 %v1861_v40, %v2275_v56  ;;  %v2281_v56 = vand.u32 4294901760, %v1897_v20 }
  0x73   : > { %588 = vmatpush.xpose.msra.mxu3 %v1765_v36 }
  0x74   : > { %542 = vmatpush.xpose.msra.mxu2 %v1779_v43  ;;  %v500_v41 = vand.u32 4294901760, %v499_v16  ;;  %v345_v43 = vld [vmem:[%s1674_s28 + $0x28] sm:$0xff] }
  0x76   : > { %394 = vmatpush.xpose.msra.mxu0 %v1776_v42  ;;  %459 = vmatpush.xpose.msra.mxu1 %v458_v51  ;;  %v493_v51 = vsub.f32 %v1845_v23, %v2277_v38 }
  0x77   : > { %590 = vmatpush.xpose.msra.mxu3 %v1776_v42 }
  0x78   : > { %545 = vmatpush.xpose.msra.mxu2 %v1792_v49  ;;  %v494_v11 = vand.u32 4294901760, %v493_v51  ;;  %v343_v49 = vld [vmem:[%s1674_s28 + $0x18] sm:$0xff] }
  0x7a   : > { %396 = vmatpush.xpose.msra.mxu0 %v1788_v47  ;;  %465 = vmatpush.xpose.msra.mxu1 %v464_v58  ;;  %v1880_v58 = vsub.f32 %v342_v26, %v1857_v35  ;;  %v2280_v26 = vand.u32 4294901760, %v1884_v59 }
  0x7b   : > { %592 = vmatpush.xpose.msra.mxu3 %v1788_v47 }
  0x7c   : > { %548 = vmatpush.xpose.msra.mxu2 %v1805_v55 }
  0x7e   : > { %398 = vmatpush.xpose.msra.mxu0 %v1801_v53  ;;  %471 = vmatpush.xpose.msra.mxu1 %v470_v0  ;;  %v1888_v0 = vand.u32 4294901760, %v367_v50 }
  0x7f   : > { %594 = vmatpush.xpose.msra.mxu3 %v1801_v53 }
  0x80   : > { %551 = vmatpush.xpose.msra.mxu2 %v1818_v61  ;;  %v1906_v32 = vsub.f32 %v367_v50, %v1888_v0  ;;  %v768_v50 = vsub.f32 %v1884_v59, %v2280_v26  ;;  %v511_v26 = vsub.f32 %v1897_v20, %v2281_v56 }
  0x82   : > { %400 = vmatpush.xpose.msra.mxu0 %v1810_v57  ;;  %477 = vmatpush.xpose.msra.mxu1 %v476_v19  ;;  %v2278_v19 = vand.u32 4294901760, %v1880_v58  ;;  %v2282_v38 = vand.u32 4294901760, %v1906_v32  ;;  %v769_v29 = vand.u32 4294901760, %v768_v50 }
  0x83   : > { %596 = vmatpush.xpose.msra.mxu3 %v1810_v57 }
  0x84   : > { %554 = vmatpush.xpose.msra.mxu2 %v1824_v63  ;;  %v505_v51 = vsub.f32 %v1880_v58, %v2278_v19  ;;  %v361_v19 = vld [vmem:[%s1674_s28 + $0xa8] sm:$0xff] }
  0x85   : > { %v1943_v56 = vand.u32 4294901760, %v361_v19 }
  0x86   : > { %402 = vmatpush.xpose.msra.mxu0 %v1830_v2  ;;  %483 = vmatpush.xpose.msra.mxu1 %v482_v34  ;;  %v1908_v34 = vand.u32 4294901760, %v365_v1  ;;  %v506_v15 = vand.u32 4294901760, %v505_v51 }
  0x87   : > { %598 = vmatpush.xpose.msra.mxu3 %v1830_v2  ;;  %v1956_v6 = vsub.f32 %v361_v19, %v1943_v56 }
  0x88   : > { %557 = vmatpush.xpose.msra.mxu2 %v1845_v23 }
  0x8a   : > { %404 = vmatpush.xpose.msra.mxu0 %v1842_v22  ;;  %489 = vmatpush.xpose.msra.mxu1 %v488_v46  ;;  %v363_v46 = vld [vmem:[%s1674_s28 + $0xb8] sm:$0xff] }
  0x8b   : > { %600 = vmatpush.xpose.msra.mxu3 %v1842_v22  ;;  %v1925_v16 = vand.u32 4294901760, %v363_v46 }
  0x8c   : > { %560 = vmatpush.xpose.msra.mxu2 %v1861_v40 }
  0x8d   : > { %v1941_v51 = vsub.f32 %v363_v46, %v1925_v16 }
  0x8e   : > { %406 = vmatpush.xpose.msra.mxu0 %v1857_v35  ;;  %495 = vmatpush.xpose.msra.mxu1 %v494_v11  ;;  %v1923_v11 = vsub.f32 %v365_v1, %v1908_v34  ;;  %v774_v1 = vsub.f32 %v1906_v32, %v2282_v38 }
  0x8f   : > { %602 = vmatpush.xpose.msra.mxu3 %v1857_v35  ;;  %v785_v38 = vand.u32 4294901760, %v1941_v51 }
  0x90   : > { %563 = vmatpush.xpose.msra.mxu2 %v1880_v58  ;;  %v775_v50 = vand.u32 4294901760, %v774_v1 }
  0x91   : > { %v786_v19 = vsub.f32 %v1941_v51, %v785_v38 }
  0x92   : > { %408 = vmatpush.xpose.msra.mxu0 %v1876_v52  ;;  %501 = vmatpush.xpose.msra.mxu1 %v500_v41  ;;  %v779_v41 = vand.u32 4294901760, %v1923_v11 }
  0x93   : > { %604 = vmatpush.xpose.msra.mxu3 %v1876_v52 }
  0x94   : > { %566 = vmatpush.xpose.msra.mxu2 %v1897_v20  ;;  %v780_v46 = vsub.f32 %v1923_v11, %v779_v41 }
  0x96   : > { %615 = vmatpush.xpose.msrb.mxu0 %v420_v12  ;;  %507 = vmatpush.xpose.msra.mxu1 %v506_v15  ;;  %v512_v12 = vand.u32 4294901760, %v511_v26  ;;  %v781_v15 = vand.u32 4294901760, %v780_v46  ;;  %v2287_v26 = vand.u32 4294901760, %v1956_v6  ;;  %v2000_v46 = vand.u32 4294901760, %v353_v18 }
  0x97   : > { %764 = vmatpush.xpose.msrb.mxu3 %v763_v62  ;;  %v1949_v62 = vand.u32 4294901760, %v359_v7 }
  0x98   : > { %719 = vmatpush.xpose.msrb.mxu2 %v1850_v28  ;;  %v792_v1 = vsub.f32 %v1956_v6, %v2287_v26 }
  0x99   : > { %v1964_v8 = vsub.f32 %v359_v7, %v1949_v62  ;;  %v1984_v7 = vand.u32 4294901760, %v355_v10 }
  0x9a   : > { %619 = vmatpush.xpose.msrb.mxu0 %v426_v13  ;;  %513 = vmatpush.xpose.msra.mxu1 %v512_v12  ;;  %v1966_v13 = vand.u32 4294901760, %v357_v60  ;;  %v793_v12 = vand.u32 4294901760, %v792_v1 }
  0x9b   : > { %770 = vmatpush.xpose.msrb.mxu3 %v769_v29  ;;  %v787_v29 = vand.u32 4294901760, %v786_v19 }
  0x9c   : > { %721 = vmatpush.xpose.msrb.mxu2 %v1865_v44 }
  0x9e   : > { %623 = vmatpush.xpose.msrb.mxu0 %v432_v17  ;;  %682 = vmatpush.xpose.msrb.mxu1 %v1692_v3  ;;  %v2285_v3 = vand.u32 4294901760, %v1964_v8  ;;  %v1979_v17 = vsub.f32 %v357_v60, %v1966_v13  ;;  %v1995_v60 = vld [vmem:[#allocation5] sm:$0x3] }
  0x9f   : > { %776 = vmatpush.xpose.msrb.mxu3 %v775_v50  ;;  %v1998_v50 = vsub.f32 %v355_v10, %v1984_v7  ;;  %v373_v25 = vperm.slane %v1995_v60, 0 }
  0xa0   : > { %723 = vmatpush.xpose.msrb.mxu2 %v1888_v0 }
  0xa1   : > { %v809_v10 = vand.u32 4294901760, %v1998_v50 }
  0xa2   : > { %627 = vmatpush.xpose.msrb.mxu0 %v438_v24  ;;  %684 = vmatpush.xpose.msrb.mxu1 %v1694_v4  ;;  %v798_v4 = vsub.f32 %v1964_v8, %v2285_v3  ;;  %v2286_v24 = vand.u32 4294901760, %v1979_v17  ;;  %v349_v3 = vld [vmem:[%s1674_s28 + $0x48] sm:$0xff] }
  0xa3   : > { %782 = vmatpush.xpose.msrb.mxu3 %v781_v15 }
  0xa4   : > { %725 = vmatpush.xpose.msrb.mxu2 %v1908_v34  ;;  %v799_v15 = vand.u32 4294901760, %v798_v4  ;;  %v804_v19 = vsub.f32 %v1979_v17, %v2286_v24  ;;  %v810_v4 = vsub.f32 %v1998_v50, %v809_v10  ;;  %v347_v24 = vld [vmem:[%s1674_s28 + $0x38] sm:$0xff] }
  0xa6   : > { %631 = vmatpush.xpose.msrb.mxu0 %v444_v30  ;;  %686 = vmatpush.xpose.msrb.mxu1 %v1696_v5  ;;  %v351_v5 = vld [vmem:[%s1674_s28 + $0x58] sm:$0xff]  ;;  %v2005_v30 = vand.u32 4294901760, %v373_v25 }
  0xa7   : > { %788 = vmatpush.xpose.msrb.mxu3 %v787_v29  ;;  %v2015_v29 = vsub.f32 %v353_v18, %v2000_v46  ;;  %v2017_v1 = vand.u32 4294901760, %v351_v5  ;;  %v2026_v18 = vand.u32 4294901760, %v349_v3 }
  0xa8   : > { %727 = vmatpush.xpose.msrb.mxu2 %v1925_v16  ;;  %v410_v31 = vsub.f32 %v373_v25, %v2005_v30  ;;  %515 = vmatmul.f32.vlgmr.msra.gmra.mxu1 %v2005_v30 }
  0xa9   : > { %v2033_v25 = vsub.f32 %v351_v5, %v2017_v1  ;;  %v2041_v33 = vsub.f32 %v349_v3, %v2026_v18  ;;  %v811_v5 = vand.u32 4294901760, %v810_v4  ;;  %v2075_v4 = vand.u32 4294901760, %v343_v49 }
  0xaa   : > { %635 = vmatpush.xpose.msrb.mxu0 %v450_v37  ;;  %688 = vmatpush.xpose.msrb.mxu1 %v1707_v9  ;;  %v411_v9 = vand.u32 4294901760, %v410_v31  ;;  %v805_v37 = vand.u32 4294901760, %v804_v19 }
  0xab   : > { %794 = vmatpush.xpose.msrb.mxu3 %v793_v12  ;;  %569 = vmatmul.f32.vlgmr.msra.gmra.mxu2 %v410_v31  ;;  %v815_v12 = vand.u32 4294901760, %v2015_v29  ;;  %v821_v19 = vand.u32 4294901760, %v2033_v25 }
  0xac   : > { %729 = vmatpush.xpose.msrb.mxu2 %v1943_v56  ;;  %v412_v26 = vsub.f32 %v410_v31, %v411_v9  ;;  %608 = vmatmul.f32.vlgmr.msra.gmra.mxu3 %v411_v9  ;;  %v2061_v31 = vand.u32 4294901760, %v345_v43 }
  0xad   : > { %v822_v3 = vsub.f32 %v2033_v25, %v821_v19 }
  0xae   : > { %639 = vmatpush.xpose.msrb.mxu0 %v456_v39  ;;  %690 = vmatpush.xpose.msrb.mxu1 %v1716_v14  ;;  %v413_v14 = vand.u32 4294901760, %v412_v26  ;;  %v2043_v39 = vand.u32 4294901760, %v347_v24 }
  0xaf   : > { %800 = vmatpush.xpose.msrb.mxu3 %v799_v15  ;;  %v816_v15 = vsub.f32 %v2015_v29, %v815_v12  ;;  %v823_v9 = vand.u32 4294901760, %v822_v3 }
  0xb0   : > { %731 = vmatpush.xpose.msrb.mxu2 %v1949_v62  ;;  %414 = vmatmul.f32.vlgmr.msra.gmra.mxu0 %v413_v14  ;;  %v341_v14 = vld [vmem:[%s1674_s28 + $0x8] sm:$0xff] }
  0xb1   : > { %v817_v26 = vand.u32 4294901760, %v816_v15  ;;  %v2090_v3 = vand.u32 4294901760, %v341_v14 }
  0xb2   : > { %643 = vmatpush.xpose.msrb.mxu0 %v462_v48  ;;  %692 = vmatpush.xpose.msrb.mxu1 %v1732_v21  ;;  %v827_v21 = vand.u32 4294901760, %v2041_v33  ;;  %v2056_v48 = vsub.f32 %v347_v24, %v2043_v39 }
  0xb3   : > { %806 = vmatpush.xpose.msrb.mxu3 %v805_v37  ;;  %v2073_v37 = vsub.f32 %v345_v43, %v2061_v31  ;;  %v374_v43 = vperm.slane %v1995_v60, 1 }
  0xb4   : > { %733 = vmatpush.xpose.msrb.mxu2 %v1966_v13  ;;  %v833_v24 = vand.u32 4294901760, %v2056_v48 }
  0xb5   : > { %v839_v15 = vand.u32 4294901760, %v2073_v37 }
  0xb6   : > { %647 = vmatpush.xpose.msrb.mxu0 %v468_v54  ;;  %694 = vmatpush.xpose.msrb.mxu1 %v1745_v27  ;;  %v2297_v54 = vand.u32 4294901760, %v1805_v55  ;;  %v828_v27 = vsub.f32 %v2041_v33, %v827_v21  ;;  %v2298_v55 = vand.u32 4294901760, %v1818_v61  ;;  %v2299_v61 = vand.u32 4294901760, %v1824_v63 }
  0xb7   : > { %812 = vmatpush.xpose.msrb.mxu3 %v811_v5  ;;  %v834_v5 = vsub.f32 %v2056_v48, %v833_v24  ;;  %v2300_v63 = vand.u32 4294901760, %v1845_v23 }
  0xb8   : > { %735 = vmatpush.xpose.msrb.mxu2 %v1984_v7 }
  0xba   : > { %651 = vmatpush.xpose.msrb.mxu0 %v2297_v54  ;;  %696 = vmatpush.xpose.msrb.mxu1 %v1765_v36  ;;  %v829_v36 = vand.u32 4294901760, %v828_v27  ;;  %v840_v54 = vsub.f32 %v2073_v37, %v839_v15  ;;  %v2099_v27 = vand.u32 4294901760, %v374_v43 }
  0xbb   : > { %818 = vmatpush.xpose.msrb.mxu3 %v817_v26  ;;  %v2088_v26 = vsub.f32 %v343_v49, %v2075_v4  ;;  %v2103_v49 = vsub.f32 %v341_v14, %v2090_v3  ;;  %v2301_v14 = vand.u32 4294901760, %v1861_v40 }
  0xbc   : > { %737 = vmatpush.xpose.msrb.mxu2 %v2000_v46 }
  0xbd   : > { %v845_v60 = vand.u32 4294901760, %v2088_v26 }
  0xbe   : > { %655 = vmatpush.xpose.msrb.mxu0 %v2298_v55  ;;  %698 = vmatpush.xpose.msrb.mxu1 %v1776_v42  ;;  %v835_v42 = vand.u32 4294901760, %v834_v5  ;;  %v851_v55 = vand.u32 4294901760, %v2103_v49 }
  0xbf   : > { %824 = vmatpush.xpose.msrb.mxu3 %v823_v9  ;;  %v846_v9 = vsub.f32 %v2088_v26, %v845_v60 }
  0xc0   : > { %739 = vmatpush.xpose.msrb.mxu2 %v2017_v1  ;;  %v852_v23 = vsub.f32 %v2103_v49, %v851_v55 }
  0xc2   : > { %659 = vmatpush.xpose.msrb.mxu0 %v2299_v61  ;;  %700 = vmatpush.xpose.msrb.mxu1 %v1788_v47  ;;  %v841_v47 = vand.u32 4294901760, %v840_v54  ;;  %v853_v40 = vand.u32 4294901760, %v852_v23  ;;  %v2303_v61 = vand.u32 4294901760, %v1897_v20 }
  0xc3   : > { %830 = vmatpush.xpose.msrb.mxu3 %v829_v36  ;;  %v2114_v36 = vsub.f32 %v374_v43, %v2099_v27  ;;  %v2302_v43 = vand.u32 4294901760, %v1880_v58 }
  0xc4   : > { %741 = vmatpush.xpose.msrb.mxu2 %v2026_v18 }
  0xc5   : > { %v752_v5 = vand.u32 4294901760, %v2114_v36 }
  0xc6   : > { %663 = vmatpush.xpose.msrb.mxu0 %v2300_v63  ;;  %702 = vmatpush.xpose.msrb.mxu1 %v1801_v53  ;;  %v847_v53 = vand.u32 4294901760, %v846_v9 }
  0xc7   : > { %836 = vmatpush.xpose.msrb.mxu3 %v835_v42 }
  0xc8   : > { %743 = vmatpush.xpose.msrb.mxu2 %v2043_v39 }
  0xca   : > { %667 = vmatpush.xpose.msrb.mxu0 %v2301_v14  ;;  %704 = vmatpush.xpose.msrb.mxu1 %v1810_v57  ;;  %v753_v57 = vsub.f32 %v2114_v36, %v752_v5 }
  0xcb   : > { %842 = vmatpush.xpose.msrb.mxu3 %v841_v47 }
  0xcc   : > { %745 = vmatpush.xpose.msrb.mxu2 %v2061_v31  ;;  %v754_v58 = vand.u32 4294901760, %v753_v57 }
  0xce   : > { %671 = vmatpush.xpose.msrb.mxu0 %v2302_v43  ;;  %706 = vmatpush.xpose.msrb.mxu1 %v1830_v2  ;;  %v2304_v2 = vand.u32 4294901760, %v1869_v45 }
  0xcf   : > { %848 = vmatpush.xpose.msrb.mxu3 %v847_v53 }
  0xd0   : > { %747 = vmatpush.xpose.msrb.mxu2 %v2075_v4 }
  0xd2   : > { %675 = vmatpush.xpose.msrb.mxu0 %v2303_v61  ;;  %708 = vmatpush.xpose.msrb.mxu1 %v1842_v22  ;;  %v2305_v22 = vand.u32 4294901760, %v1884_v59 }
  0xd3   : > { %854 = vmatpush.xpose.msrb.mxu3 %v853_v40 }
  0xd4   : > { %749 = vmatpush.xpose.msrb.mxu2 %v2090_v3 }
  0xd5   : > { %677 = vmatmul.f32.vlgmr.msrb.gmra.mxu0 %v2005_v30 }
  0xd6   : > { %862 = vmatpush.xpose.msra.mxu0 %v1869_v45  ;;  %710 = vmatpush.xpose.msrb.mxu1 %v1857_v35  ;;  %v2306_v35 = vand.u32 4294901760, %v1906_v32 }
  0xd7   : > { %1023 = vmatpush.xpose.msra.mxu3 %v1850_v28  ;;  %755 = vmatmul.f32.vlgmr.msrb.gmra.mxu2 %v754_v58 }
  0xd8   : > { %956 = vmatpush.xpose.msra.mxu2 %v2304_v2  ;;  %856 = vmatmul.f32.vlgmr.msrb.gmra.mxu3 %v2099_v27 }
  0xda   : > { %865 = vmatpush.xpose.msra.mxu0 %v1884_v59  ;;  %712 = vmatpush.xpose.msrb.mxu1 %v1876_v52 }
  0xdb   : > { %1025 = vmatpush.xpose.msra.mxu3 %v1865_v44 }
  0xdc   : > { %960 = vmatpush.xpose.msra.mxu2 %v2305_v22 }
  0xdd   : > { %714 = vmatmul.f32.vlgmr.msrb.gmra.mxu1 %v2005_v30 }
  0xde   : > { %868 = vmatpush.xpose.msra.mxu0 %v1906_v32  ;;  %915 = vmatpush.xpose.msra.mxu1 %v1850_v28  ;;  %v2307_v28 = vand.u32 4294901760, %v1956_v6 }
  0xdf   : > { %1027 = vmatpush.xpose.msra.mxu3 %v1888_v0 }
  0xe0   : > { %964 = vmatpush.xpose.msra.mxu2 %v2306_v35 }
  0xe2   : > { %871 = vmatpush.xpose.msra.mxu0 %v1923_v11  ;;  %917 = vmatpush.xpose.msra.mxu1 %v1865_v44  ;;  %v2308_v44 = vand.u32 4294901760, %v1964_v8 }
  0xe3   : > { %1029 = vmatpush.xpose.msra.mxu3 %v1908_v34 }
  0xe4   : > { %968 = vmatpush.xpose.msra.mxu2 %v779_v41 }
  0xe6   : > { %874 = vmatpush.xpose.msra.mxu0 %v1941_v51  ;;  %919 = vmatpush.xpose.msra.mxu1 %v1888_v0 }
  0xe7   : > { %1031 = vmatpush.xpose.msra.mxu3 %v1925_v16 }
  0xe8   : > { %972 = vmatpush.xpose.msra.mxu2 %v785_v38  ;;  %v2309_v38 = vand.u32 4294901760, %v1979_v17 }
  0xea   : > { %877 = vmatpush.xpose.msra.mxu0 %v1956_v6  ;;  %921 = vmatpush.xpose.msra.mxu1 %v1908_v34 }
  0xeb   : > { %1033 = vmatpush.xpose.msra.mxu3 %v1943_v56 }
  0xec   : > { %976 = vmatpush.xpose.msra.mxu2 %v2307_v28 }
  0xee   : > { %880 = vmatpush.xpose.msra.mxu0 %v1964_v8  ;;  %923 = vmatpush.xpose.msra.mxu1 %v1925_v16 }
  0xef   : > { %1035 = vmatpush.xpose.msra.mxu3 %v1949_v62 }
  0xf0   : > { %980 = vmatpush.xpose.msra.mxu2 %v2308_v44 }
  0xf2   : > { %883 = vmatpush.xpose.msra.mxu0 %v1979_v17  ;;  %925 = vmatpush.xpose.msra.mxu1 %v1943_v56 }
  0xf3   : > { %1037 = vmatpush.xpose.msra.mxu3 %v1966_v13 }
  0xf4   : > { %984 = vmatpush.xpose.msra.mxu2 %v2309_v38 }
  0xf6   : > { %886 = vmatpush.xpose.msra.mxu0 %v1998_v50  ;;  %927 = vmatpush.xpose.msra.mxu1 %v1949_v62 }
  0xf7   : > { %1039 = vmatpush.xpose.msra.mxu3 %v1984_v7 }
  0xf8   : > { %988 = vmatpush.xpose.msra.mxu2 %v809_v10 }
  0xfa   : > { %889 = vmatpush.xpose.msra.mxu0 %v2015_v29  ;;  %929 = vmatpush.xpose.msra.mxu1 %v1966_v13 }
  0xfb   : > { %1041 = vmatpush.xpose.msra.mxu3 %v2000_v46 }
  0xfc   : > { %992 = vmatpush.xpose.msra.mxu2 %v815_v12 }
  0xfe   : > { %892 = vmatpush.xpose.msra.mxu0 %v2033_v25  ;;  %931 = vmatpush.xpose.msra.mxu1 %v1984_v7  ;;  %v1061_v25 = vld [vmem:[%s297_s10] sm:$0x1] }
  0xff   : > { %1043 = vmatpush.xpose.msra.mxu3 %v2017_v1 }
 0x100   : > { %996 = vmatpush.xpose.msra.mxu2 %v821_v19 }
 0x102   : > { %895 = vmatpush.xpose.msra.mxu0 %v2041_v33  ;;  %933 = vmatpush.xpose.msra.mxu1 %v2000_v46 }
 0x103   : > { %1045 = vmatpush.xpose.msra.mxu3 %v2026_v18 }
 0x104   : > { %1000 = vmatpush.xpose.msra.mxu2 %v827_v21 }
 0x106   : > { %898 = vmatpush.xpose.msra.mxu0 %v2056_v48  ;;  %935 = vmatpush.xpose.msra.mxu1 %v2017_v1  ;;  %v1060_v1 = vld [vmem:[%s338_s29] sm:$0x1] }
 0x107   : > { %1047 = vmatpush.xpose.msra.mxu3 %v2043_v39 }
 0x108   : > { %1004 = vmatpush.xpose.msra.mxu2 %v833_v24 }
 0x10a   : > { %901 = vmatpush.xpose.msra.mxu0 %v2073_v37  ;;  %937 = vmatpush.xpose.msra.mxu1 %v2026_v18 }
 0x10b   : > { %1049 = vmatpush.xpose.msra.mxu3 %v2061_v31 }
 0x10c   : > { %1008 = vmatpush.xpose.msra.mxu2 %v839_v15 }
 0x10e   : > { %904 = vmatpush.xpose.msra.mxu0 %v2088_v26  ;;  %939 = vmatpush.xpose.msra.mxu1 %v2043_v39 }
 0x10f   : > { %1051 = vmatpush.xpose.msra.mxu3 %v2075_v4 }
 0x110   : > { %1012 = vmatpush.xpose.msra.mxu2 %v845_v60 }
 0x112   : > { %907 = vmatpush.xpose.msra.mxu0 %v2103_v49  ;;  %941 = vmatpush.xpose.msra.mxu1 %v2061_v31 }
 0x113   : > { %1053 = vmatpush.xpose.msra.mxu3 %v2090_v3 }
 0x114   : > { %1016 = vmatpush.xpose.msra.mxu2 %v851_v55 }
 0x115   : > { %910 = vmatmul.f32.vlgmr.msra.gmra.mxu0 %v2114_v36 }
 0x116   : > { %943 = vmatpush.xpose.msra.mxu1 %v2075_v4  ;;  %1055 = vmatmul.f32.vlgmr.msra.gmra.mxu3 %v2099_v27  ;;  %v1059_v4 = vld [vmem:[%s288_s11] sm:$0x1]  ;;  %s1438_s11 = scalar_lea.hbm %s2273_s5, 2 }
 0x117   : > { %1018 = vmatmul.f32.vlgmr.msra.gmra.mxu2 %v2099_v27  ;;  %p1440_p1 = scmp.lt.s32.totalorder %s1438_s11, %s1434_s24 }
 0x119   : > { %p1441_p2 = por %p1440_p1, %p1439_p12 }
 0x11a   : > { %945 = vmatpush.xpose.msra.mxu1 %v2090_v3 }
 0x11b   : > { %p1442_p5 = pnand %p1441_p2, %p1437_p11 }
 0x11d   : > { %949 = vmatmul.f32.vlgmr.msra.gmra.mxu1 %v752_v5 }
 0x125   : > { %v516_v6 = vpop.f32.mrf.mxu1 }
 0x12d   : > { %v415_v45 = vpop.f32.mrf.mxu0 }
 0x12e   : > { %v517_v52 = vadd.f32 %v516_v6, %v415_v45  ;;  %v570_v56 = vpop.f32.mrf.mxu2 }
 0x12f   : > { %v609_v0 = vpop.f32.mrf.mxu3 }
 0x130   : > { %v571_v59 = vadd.f32 %v570_v56, %v517_v52 }
 0x132   : > { %v610_v20 = vadd.f32 %v609_v0, %v571_v59 }
 0x152   : > { %v678_v32 = vpop.f32.mrf.mxu0 }
 0x153   : > { %v679_v34 = vadd.f32 %v678_v32, %v610_v20 }
 0x15a   : > { %v715_v11 = vpop.f32.mrf.mxu1  ;;  %v756_v41 = vpop.f32.mrf.mxu2 }
 0x15b   : > { %v716_v16 = vadd.f32 %v715_v11, %v679_v34  ;;  %v857_v62 = vpop.f32.mrf.mxu3 }
 0x15d   : > { %v757_v51 = vadd.f32 %v756_v41, %v716_v16 }
 0x15f   : > { %v858_v13 = vadd.f32 %v857_v62, %v757_v51 }
 0x192   : > { %v911_v8 = vpop.f32.mrf.mxu0 }
 0x193   : > { %v912_v17 = vadd.f32 %v911_v8, %v858_v13 }
 0x199   : > { %v1056_v30 = vpop.f32.mrf.mxu3 }
 0x19a   : > { %v950_v7 = vpop.f32.mrf.mxu1  ;;  %v1019_v50 = vpop.f32.mrf.mxu2 }
 0x19b   : > { %v951_v46 = vadd.f32 %v950_v7, %v912_v17 }
 0x19d   : > { %v1020_v10 = vadd.f32 %v1019_v50, %v951_v46 }
 0x19f   : > { %v1057_v29 = vadd.f32 %v1056_v30, %v1020_v10 }
 0x1a1   : > { %v1062_v18 = vmul.f32 0.5, %v1057_v29 }
 0x1a3   : > { %v1063_v12 = vmul.f32 %v1062_v18, %v1060_v1 }
 0x1a5   : > { %1290 = vtanh.f32 %v1063_v12 }
 0x1ab   : > { %v1291_v33 = vpop.eup %1290 }
 0x1ac   : > { %v1065_v39 = vadd.f32 %v1291_v33, %v1061_v25 }
 0x1ae   : > { %1292 = vtanh.f32 %v1065_v39 }
 0x1b4   : > { %v1293_v19 = vpop.eup %1292 }
 0x1b5   : > { %v1067_v21 = vmul.f32 %v1293_v19, %v1291_v33 }
 0x1b7   : > { %1294 = vtanh.f32 %v1067_v21 }
 0x1bd   : > { %v1295_v48 = vpop.eup %1294 }
 0x1be   : > { %v1069_v31 = vmul.f32 %v1295_v48, %v1060_v1 }
 0x1c0   : > { %1296 = vtanh.f32 %v1069_v31 }
 0x1c6   : > { %v1297_v24 = vpop.eup %1296 }
 0x1c7   : > { %v1071_v37 = vmul.f32 %v1297_v24, %v1067_v21 }
 0x1c9   : > { %v1072_v15 = vmul.f32 %v1071_v37, %v1061_v25 }
 0x1cb   : > { %v1073_v26 = vmul.f32 %v1072_v15, %v1059_v4 }
 0x1cd   : > { %v1074_v3 = vmul.f32 %v1073_v26, %v1061_v25 }
 0x1cf   : > { %1075 = vst [vmem:[%s334_s17] sm:$0x1] %v1074_v3 }
 0x1d0   : > { %1445 = shalt.err (!%p1442_p5)
}
 0x1d1   : > { %1231 = dma.vmem_to_hbm [thread:$0]  (%p1630_p7), %s1088_s27, 16, %s1090_s23, %s1077_s0  }
 0x1d2 PF: > { %s1101_s9 = sand.u32 1, %s1480_s18   ;;  %p2310_p10 = scmp.ge.s32.totalorder %s1492_s21, 2 }
 0x1d3   : > { %s1102_s12 = scalar_lea.sflag [#allocation4], %s1101_s9 }
 0x1d4   : > { %p1248_p0 = pnand %p2310_p10, %p1634_p9 }
 0x1d6   : > { %p1249_p3 = pneg %p1248_p0 }
 0x1d8   : > { %1475 = dma.done.wait (%p1249_p3), %s1102_s12, 16  }
 0x1d9   : > { %1477 = vsyncadd (%p1249_p3), %s1102_s12, 4294967280  ;;  %p19_p6 = scmp.ge.s32.totalorder %s1548_s22, 4   ;;  %s2311_s18 = smov %s1484_s19 }
 0x1da   : > { %s2312_s19 = smov %s1488_s20  ;;  %s2313_s20 = smov %s1559_s25 }
 0x1db   : > { %s2314_s21 = smov %s1548_s22  ;;  %21 = sbr.rel (!%p19_p6) target bundleno = 8 (0x8), region = 114 }
 0x1e0   :  { %1107 = vsyncpa [#allocation3], 1 }
 0x1e1   :  { %1109 = vsyncpa [#allocation3 + $0x1], 1 }
 0x1e2   :  { %1110 = vsyncpa [#allocation6], 1 }
 0x1e3   :  { %1111 = vsyncpa [#allocation4], 1 }
 0x1e4   :  { %1113 = vsyncpa [#allocation4 + $0x1], 1 }

</bundles_post_ra>
